<compile_context>
chip_gen: v7x
topology: tpu7x:2x2x1
jax: 0.10.0
libtpu: 0.0.40
codegen_flags: <defaults>
</compile_context>

<pallas_src>
import jax
import jax.numpy as jnp
from jax.experimental import pallas as pl
from jax.experimental.pallas import tpu as pltpu


def _round_up(x, m):
    return (x + m - 1) // m * m


def residual_layer_kernel(x_ref, w1_ref, b1_ref, w2_ref, b2_ref, o_ref):
    # Whole batch-tile + both (tiny) weight matrices are resident in VMEM.
    x = x_ref[...]                                                      # (TB, D)
    # First dot: K = D (100), N = Dp (128).  Cast is a no-op for f32 weights,
    # opts into the bf16 MXU rate if prepare_params stored bf16 weights.
    h = jnp.dot(x.astype(w1_ref.dtype), w1_ref[...],
                preferred_element_type=jnp.float32)                     # MXU
    h = jnp.maximum(h + b1_ref[...], 0.0)                               # VPU (f32)
    # Second dot: K = Dp (128), N = D (100).  Padded cols of h are exactly 0
    # and padded rows of W2^T are 0, so the result equals the unpadded matmul.
    y = jnp.dot(h.astype(w2_ref.dtype), w2_ref[...],
                preferred_element_type=jnp.float32)                     # MXU
    y = jnp.maximum(y + b2_ref[...], 0.0)                               # VPU (f32)
    o_ref[...] = (y + x.astype(jnp.float32)).astype(o_ref.dtype)        # residual


def prepare_params(w1, b1, w2, b2, *, weight_dtype=None):
    """One-time parameter prep (do NOT call per step).

    w1, w2: (out, in) PyTorch nn.Linear layout with out == in == D; b1,b2: (D,).
    Returns:
      w1_t: (D, Dp)  = W1^T, output (lane) dim zero-padded to Dp = round_up(D,128)
      b1_r: (1, Dp)  zero-padded
      w2_t: (Dp, D)  = W2^T, input (sublane) dim zero-padded
      b2_r: (1, D)
    Hidden activation is the only 128-padded tensor and it never touches HBM.
    weight_dtype (e.g. jnp.bfloat16) is worth using on v5e; accumulation stays f32.
    """
    D = w1.shape[0]
    assert w1.shape == (D, D) and w2.shape == (D, D)
    assert b1.shape == (D,) and b2.shape == (D,)
    Dp = _round_up(D, 128)
    w_dt = weight_dtype if weight_dtype is not None else w1.dtype
    w1_t = jnp.zeros((D, Dp), w_dt).at[:, :D].set(w1.T.astype(w_dt))
    w2_t = jnp.zeros((Dp, D), w_dt).at[:D, :].set(w2.T.astype(w_dt))
    b1_r = jnp.zeros((1, Dp), jnp.float32).at[0, :D].set(b1.astype(jnp.float32))
    b2_r = b2.astype(jnp.float32).reshape(1, D)
    return w1_t, b1_r, w2_t, b2_r


def residual_layer(x, w1_t, b1_r, w2_t, b2_r, *, tb=2048):
    """x: (B, D) unpadded.  Params from prepare_params()."""
    B, D = x.shape
    Dp = w1_t.shape[1]
    assert w1_t.shape == (D, Dp) and w2_t.shape == (Dp, D)
    assert b1_r.shape == (1, Dp) and b2_r.shape == (1, D)

    # Batch tile: multiple of 128 (sublane-legal, fills the MXU M dim), big
    # enough to amortize per-step overhead, but clamped so the grid has >= 2
    # steps whenever B allows it (keeps both v7x TensorCores busy).  The last
    # block may be partial; Pallas masks the out-of-bounds rows on store.
    half = _round_up(pl.cdiv(B, 2), 128)
    tb_eff = max(128, min(tb, half))
    grid = (pl.cdiv(B, tb_eff),)

    w_itemsize = jnp.dtype(w1_t.dtype).itemsize
    x_itemsize = jnp.dtype(x.dtype).itemsize
    cost = pl.CostEstimate(
        flops=4 * B * D * Dp,                                   # two dense matmuls
        transcendentals=0,
        bytes_accessed=(2 * B * D) * x_itemsize
        + (2 * D * Dp) * w_itemsize
        + (Dp + D) * 4,
    )

    out = pl.pallas_call(
        residual_layer_kernel,
        out_shape=jax.ShapeDtypeStruct((B, D), x.dtype),
        grid_spec=pltpu.PrefetchScalarGridSpec(
            num_scalar_prefetch=0,
            grid=grid,
            in_specs=[
                pl.BlockSpec((tb_eff, D), lambda i: (i, 0)),    # x tile (native width)
                pl.BlockSpec((D, Dp), lambda i: (0, 0)),        # W1^T (resident)
                pl.BlockSpec((1, Dp), lambda i: (0, 0)),        # b1
                pl.BlockSpec((Dp, D), lambda i: (0, 0)),        # W2^T (resident)
                pl.BlockSpec((1, D), lambda i: (0, 0)),         # b2
            ],
            out_specs=pl.BlockSpec((tb_eff, D), lambda i: (i, 0)),
        ),
        compiler_params=pltpu.CompilerParams(
            dimension_semantics=("parallel",),                  # shards grid across TCs on v7x
        ),
        cost_estimate=cost,
    )(x, w1_t, b1_r, w2_t, b2_r)
    return out


def residual_layer_ref(x, w1, b1, w2, b2):
    h = jnp.maximum(x @ w1.T + b1, 0.0)
    y = jnp.maximum(h @ w2.T + b2, 0.0)
    return y + x


if __name__ == "__main__":
    # Module defaults: in_dim = out_dim = 100 (exercises the non-128 lane width
    # and the partial-last-block batch path).  Small shapes for the smoke test.
    B, D = 16, 100
    key = jax.random.PRNGKey(0)
    kx, kw1, kb1, kw2, kb2 = jax.random.split(key, 5)

    # Deterministic init mimicking nn.Linear's U(-1/sqrt(fan_in), 1/sqrt(fan_in)).
    bound = 1.0 / (D ** 0.5)
    x = jax.random.normal(kx, (B, D), dtype=jnp.float32)
    w1 = jax.random.uniform(kw1, (D, D), jnp.float32, -bound, bound)  # (out, in)
    b1 = jax.random.uniform(kb1, (D,), jnp.float32, -bound, bound)
    w2 = jax.random.uniform(kw2, (D, D), jnp.float32, -bound, bound)
    b2 = jax.random.uniform(kb2, (D,), jnp.float32, -bound, bound)

    # One-time param prep (transpose + pad hidden dim) — hoisted out of hot path.
    params = prepare_params(w1, b1, w2, b2)

    out = residual_layer(x, *params)
    out = jax.block_until_ready(out)

    ref = residual_layer_ref(x, w1, b1, w2, b2)
    assert out.shape == (B, D)
    assert jnp.allclose(out, ref, atol=1e-5, rtol=1e-5), "mismatch vs reference"
    print("KERNEL_OK")
</pallas_src>

<mosaic_0001>
module attributes {stable_mosaic.version = 11 : i64} {
  func.func @residual_layer_kernel(%arg0: i32, %arg1: memref<128x100xf32, #tpu.memory_space<vmem>>, %arg2: memref<100x128xf32, #tpu.memory_space<vmem>>, %arg3: memref<1x128xf32, #tpu.memory_space<vmem>>, %arg4: memref<128x100xf32, #tpu.memory_space<vmem>>, %arg5: memref<1x100xf32, #tpu.memory_space<vmem>>, %arg6: memref<128x100xf32, #tpu.memory_space<vmem>>) attributes {dimension_semantics = [#tpu.dimension_semantics<parallel>], iteration_bounds = array<i64: 1>, scalar_prefetch = 0 : i64, scratch_operands = 0 : i64, tpu.core_type = #tpu.core_type<tc>, window_params = [{transform_indices = @transform_0, window_bounds = array<i64: 128, 100>}, {pipeline_mode = #tpu.pipeline_mode<synchronous>, transform_indices = @transform_1, window_bounds = array<i64: 100, 128>}, {pipeline_mode = #tpu.pipeline_mode<synchronous>, transform_indices = @transform_2, window_bounds = array<i64: 1, 128>}, {pipeline_mode = #tpu.pipeline_mode<synchronous>, transform_indices = @transform_3, window_bounds = array<i64: 128, 100>}, {pipeline_mode = #tpu.pipeline_mode<synchronous>, transform_indices = @transform_4, window_bounds = array<i64: 1, 100>}, {transform_indices = @transform_5, window_bounds = array<i64: 128, 100>}]} {
    %c0 = arith.constant 0 : index
    %c0_0 = arith.constant 0 : index
    %0 = vector.load %arg1[%c0, %c0_0] : memref<128x100xf32, #tpu.memory_space<vmem>>, vector<128x100xf32>
    %c0_1 = arith.constant 0 : index
    %c0_2 = arith.constant 0 : index
    %1 = vector.load %arg2[%c0_1, %c0_2] : memref<100x128xf32, #tpu.memory_space<vmem>>, vector<100x128xf32>
    %cst = arith.constant dense<0.000000e+00> : vector<128x128xf32>
    %2 = tpu.matmul %0, %1, %cst {dimension_numbers = #tpu.dot_dimension_numbers<[1], [0], [0], [1], [0, 0, 1, 1], [], []>} : vector<128x100xf32>, vector<100x128xf32>, vector<128x128xf32> -> vector<128x128xf32>
    %c0_3 = arith.constant 0 : index
    %c0_4 = arith.constant 0 : index
    %3 = vector.load %arg3[%c0_3, %c0_4] : memref<1x128xf32, #tpu.memory_space<vmem>>, vector<1x128xf32>
    %4 = vector.broadcast %3 : vector<1x128xf32> to vector<128x128xf32>
    %5 = arith.addf %2, %4 : vector<128x128xf32>
    %cst_5 = arith.constant 0.000000e+00 : f32
    %6 = vector.broadcast %cst_5 : f32 to vector<128x128xf32>
    %7 = arith.maximumf %5, %6 : vector<128x128xf32>
    %c0_6 = arith.constant 0 : index
    %c0_7 = arith.constant 0 : index
    %8 = vector.load %arg4[%c0_6, %c0_7] : memref<128x100xf32, #tpu.memory_space<vmem>>, vector<128x100xf32>
    %cst_8 = arith.constant dense<0.000000e+00> : vector<128x100xf32>
    %9 = tpu.matmul %7, %8, %cst_8 {dimension_numbers = #tpu.dot_dimension_numbers<[1], [0], [0], [1], [0, 0, 1, 1], [], []>} : vector<128x128xf32>, vector<128x100xf32>, vector<128x100xf32> -> vector<128x100xf32>
    %c0_9 = arith.constant 0 : index
    %c0_10 = arith.constant 0 : index
    %10 = vector.load %arg5[%c0_9, %c0_10] : memref<1x100xf32, #tpu.memory_space<vmem>>, vector<1x100xf32>
    %11 = vector.broadcast %10 : vector<1x100xf32> to vector<128x100xf32>
    %12 = arith.addf %9, %11 : vector<128x100xf32>
    %cst_11 = arith.constant 0.000000e+00 : f32
    %13 = vector.broadcast %cst_11 : f32 to vector<128x100xf32>
    %14 = arith.maximumf %12, %13 : vector<128x100xf32>
    %15 = arith.addf %14, %0 : vector<128x100xf32>
    %c0_12 = arith.constant 0 : index
    %c0_13 = arith.constant 0 : index
    %16 = vector.load %arg6[%c0_12, %c0_13] : memref<128x100xf32, #tpu.memory_space<vmem>>, vector<128x100xf32>
    tpu.vector_store %arg6[%c0_12, %c0_13], %15 {strides = array<i32>} : memref<128x100xf32, #tpu.memory_space<vmem>>, vector<128x100xf32>,
    return
  }
  func.func @transform_0(%arg0: i32) -> (i32, i32) {
    %c0_i32 = arith.constant 0 : i32
    %c0_i32_0 = arith.constant 0 : i32
    return %arg0, %c0_i32 : i32, i32
  }
  func.func @transform_1(%arg0: i32) -> (i32, i32) {
    %c0_i32 = arith.constant 0 : i32
    %c0_i32_0 = arith.constant 0 : i32
    %c0_i32_1 = arith.constant 0 : i32
    return %c0_i32, %c0_i32_0 : i32, i32
  }
  func.func @transform_2(%arg0: i32) -> (i32, i32) {
    %c0_i32 = arith.constant 0 : i32
    %c0_i32_0 = arith.constant 0 : i32
    %c0_i32_1 = arith.constant 0 : i32
    return %c0_i32, %c0_i32_0 : i32, i32
  }
  func.func @transform_3(%arg0: i32) -> (i32, i32) {
    %c0_i32 = arith.constant 0 : i32
    %c0_i32_0 = arith.constant 0 : i32
    %c0_i32_1 = arith.constant 0 : i32
    return %c0_i32, %c0_i32_0 : i32, i32
  }
  func.func @transform_4(%arg0: i32) -> (i32, i32) {
    %c0_i32 = arith.constant 0 : i32
    %c0_i32_0 = arith.constant 0 : i32
    %c0_i32_1 = arith.constant 0 : i32
    return %c0_i32, %c0_i32_0 : i32, i32
  }
  func.func @transform_5(%arg0: i32) -> (i32, i32) {
    %c0_i32 = arith.constant 0 : i32
    %c0_i32_0 = arith.constant 0 : i32
    return %arg0, %c0_i32 : i32, i32
  }
}

</mosaic_0001>

<bundles_post_ra>
// kernel: tpu_custom_call.1
= control target key start
LH: loop header
LB: loop body
LE: loop exit
PB: predicated region body
PF: predicated region fallthrough
CT: control target
= control target key end

     0   :  { %10 = vsyncpa [#allocation3], 0  ;;  %vm57_vm0 = vcmask 818176   ;;  %vm106_vm1 = vcmask 1043456   ;;  %s1072_s0 = inlined_call_operand.vmem [shape: f32[16,100], index: 0, kind: input, shape index: {}]   ;;  %s1073_s1 = inlined_call_operand.vmem [shape: f32[100,128], index: 1, kind: input, shape index: {}]   ;;  %s1074_s2 = inlined_call_operand.vmem [shape: f32[1,128], index: 2, kind: input, shape index: {}]   ;;  %s1075_s3 = inlined_call_operand.vmem [shape: f32[128,100], index: 3, kind: input, shape index: {}]   ;;  %s1076_s4 = inlined_call_operand.vmem [shape: f32[1,100], index: 4, kind: input, shape index: {}]   ;;  %s1077_s5 = inlined_call_operand.hbm [shape: f32[16,100], index: 5, kind: output, shape index: {}]  }
   0x1   :  { %v37_v0 = vld [vmem:[%s1073_s1] sm:$0xff]  ;;  %v38_v1 = vld [vmem:[%s1073_s1 + $0x8] sm:$0xff]  ;;  %v39_v3 = vld [vmem:[%s1073_s1 + $0x10] sm:$0xff] }
   0x2   :  { %v689_v2 = vpack.c.bf16 %v38_v1, %v37_v0  ;;  %v40_v4 = vld [vmem:[%s1073_s1 + $0x18] sm:$0xff]  ;;  %v41_v6 = vld [vmem:[%s1073_s1 + $0x20] sm:$0xff]  ;;  %v42_v7 = vld [vmem:[%s1073_s1 + $0x28] sm:$0xff] }
   0x3   :  { %v693_v5 = vpack.c.bf16 %v40_v4, %v39_v3  ;;  %v826_v8 = vld [vmem:[%s1072_s0] sm:$0xff]  ;;  %v697_v9 = vpack.c.bf16 %v42_v7, %v41_v6  ;;  %v43_v10 = vld [vmem:[%s1073_s1 + $0x30] sm:$0xff]  ;;  %v44_v11 = vld [vmem:[%s1073_s1 + $0x38] sm:$0xff] }
   0x4   :  { %690 = vmatprep.subr.bf16.mxu0 %v689_v2  ;;  %609 = vmatprep.mubr.msk.f32.mxu0 %vm57_vm0, %v826_v8  ;;  %v701_v12 = vpack.c.bf16 %v44_v11, %v43_v10  ;;  %v45_v13 = vld [vmem:[%s1073_s1 + $0x40] sm:$0xff]  ;;  %v46_v14 = vld [vmem:[%s1073_s1 + $0x48] sm:$0xff]  ;;  %v273_v17 = vld [vmem:[%s1075_s3 + $0x10] sm:$0xff] }
   0x5   :  { %692 = vmatpush3.bf16.msra.mxu0 %v689_v2  ;;  %v271_v15 = vld [vmem:[%s1075_s3] sm:$0xff]  ;;  %v272_v16 = vld [vmem:[%s1075_s3 + $0x8] sm:$0xff]  ;;  %v274_v19 = vld [vmem:[%s1075_s3 + $0x18] sm:$0xff]  ;;  %v705_v23 = vpack.c.bf16 %v46_v14, %v45_v13 }
   0x6   :  { %694 = vmatprep.subr.bf16.mxu0 %v693_v5  ;;  %v713_v18 = vpack.c.bf16 %v272_v16, %v271_v15  ;;  %v717_v20 = vpack.c.bf16 %v274_v19, %v273_v17  ;;  %v275_v21 = vld [vmem:[%s1075_s3 + $0x20] sm:$0xff]  ;;  %v276_v22 = vld [vmem:[%s1075_s3 + $0x28] sm:$0xff]  ;;  %v47_v24 = vld [vmem:[%s1073_s1 + $0x50] sm:$0xff] }
   0x7   :  { %v48_v25 = vld [vmem:[%s1073_s1 + $0x58] sm:$0xff]  ;;  %v721_v26 = vpack.c.bf16 %v276_v22, %v275_v21  ;;  %v277_v27 = vld [vmem:[%s1075_s3 + $0x30] sm:$0xff]  ;;  %v279_v31 = vld [vmem:[%s1075_s3 + $0x40] sm:$0xff] }
   0x8   :  { %714 = vmatprep.subr.bf16.mxu1 %v713_v18  ;;  %v278_v28 = vld [vmem:[%s1075_s3 + $0x38] sm:$0xff]  ;;  %v709_v29 = vpack.c.bf16 %v48_v25, %v47_v24  ;;  %v280_v32 = vld [vmem:[%s1075_s3 + $0x48] sm:$0xff]  ;;  %v49_v33 = vld [vmem:[%s1073_s1 + $0x60] sm:$0xf] }
   0x9   :  { %696 = vmatpush3.bf16.msra.mxu0 %v693_v5  ;;  %716 = vmatpush3.bf16.msra.mxu1 %v713_v18  ;;  %v725_v30 = vpack.c.bf16 %v278_v28, %v277_v27  ;;  %v729_v34 = vpack.c.bf16 %v280_v32, %v279_v31  ;;  %v281_v35 = vld [vmem:[%s1075_s3 + $0x50] sm:$0xff]  ;;  %v282_v36 = vld [vmem:[%s1075_s3 + $0x58] sm:$0xff]  ;;  %v890_v37 = vld [vmem:[%s1072_s0 + $0x8] sm:$0xff] }
   0xa   :  { %698 = vmatprep.subr.bf16.mxu0 %v697_v9  ;;  %718 = vmatprep.subr.bf16.mxu1 %v717_v20  ;;  %v895_v38 = vld [vmem:[%s1072_s0 + $0x10] sm:$0xff]  ;;  %v733_v39 = vpack.c.bf16 %v282_v36, %v281_v35  ;;  %v283_v40 = vld [vmem:[%s1075_s3 + $0x60] sm:$0xff]  ;;  %v284_v41 = vld [vmem:[%s1075_s3 + $0x68] sm:$0xff] }
   0xb   :  { %v910_v42 = vld [vmem:[%s1072_s0 + $0x18] sm:$0xff]  ;;  %v915_v43 = vld [vmem:[%s1072_s0 + $0x20] sm:$0xff]  ;;  %v737_v44 = vpack.c.bf16 %v284_v41, %v283_v40  ;;  %v924_v45 = vld [vmem:[%s1072_s0 + $0x28] sm:$0xff] }
   0xc   :  { %v929_v46 = vld [vmem:[%s1072_s0 + $0x30] sm:$0xff]  ;;  %v938_v47 = vld [vmem:[%s1072_s0 + $0x38] sm:$0xff]  ;;  %v943_v48 = vld [vmem:[%s1072_s0 + $0x40] sm:$0xff] }
   0xd   :  { %700 = vmatpush3.bf16.msra.mxu0 %v697_v9  ;;  %720 = vmatpush3.bf16.msra.mxu1 %v717_v20  ;;  %v952_v49 = vld [vmem:[%s1072_s0 + $0x48] sm:$0xff]  ;;  %v957_v50 = vld [vmem:[%s1072_s0 + $0x50] sm:$0xff]  ;;  %v966_v51 = vld [vmem:[%s1072_s0 + $0x58] sm:$0xff] }
   0xe   :  { %702 = vmatprep.subr.bf16.mxu0 %v701_v12  ;;  %722 = vmatprep.subr.bf16.mxu1 %v721_v26  ;;  %v971_v52 = vld [vmem:[%s1072_s0 + $0x60] sm:$0xff]  ;;  %v980_v53 = vld [vmem:[%s1072_s0 + $0x68] sm:$0xff]  ;;  %v985_v54 = vld [vmem:[%s1072_s0 + $0x70] sm:$0xff] }
   0xf   :  { %v994_v55 = vld [vmem:[%s1072_s0 + $0x78] sm:$0xff]  ;;  %v285_v56 = vld [vmem:[%s1075_s3 + $0x70] sm:$0xff]  ;;  %v503_v59 = vld [vmem:[%s1074_s2] ss:$0 sm:$0xff] }
  0x10   :  { %v286_v57 = vld [vmem:[%s1075_s3 + $0x78] sm:$0xff] }
  0x11   :  { %704 = vmatpush3.bf16.msra.mxu0 %v701_v12  ;;  %724 = vmatpush3.bf16.msra.mxu1 %v721_v26  ;;  %v741_v58 = vpack.c.bf16 %v286_v57, %v285_v56 }
  0x12   :  { %706 = vmatprep.subr.bf16.mxu0 %v705_v23  ;;  %726 = vmatprep.subr.bf16.mxu1 %v725_v30 }
  0x15   :  { %708 = vmatpush3.bf16.msra.mxu0 %v705_v23  ;;  %728 = vmatpush3.bf16.msra.mxu1 %v725_v30 }
  0x16   :  { %710 = vmatprep.subr.bf16.mxu0 %v709_v29  ;;  %730 = vmatprep.subr.bf16.mxu1 %v729_v34 }
  0x19   :  { %712 = vmatpush3.bf16.msra.mxu0 %v709_v29  ;;  %732 = vmatpush3.bf16.msra.mxu1 %v729_v34 }
  0x1a   :  { %607 = vmatprep.subr.msk.mxu0 %vm106_vm1, %v49_v33  ;;  %734 = vmatprep.subr.bf16.mxu1 %v733_v39 }
  0x1d   :  { %608 = vmatpush3.msk.msra.mxu0 %vm106_vm1, %v49_v33  ;;  %736 = vmatpush3.bf16.msra.mxu1 %v733_v39 }
  0x1e   :  { %610 = vmatmul.mubr.msk.f32.vlgmr.msra.gmra.mrb[0].mxu0 %vm57_vm0, %v890_v37  ;;  %738 = vmatprep.subr.bf16.mxu1 %v737_v44 }
  0x1f   :  { %612 = vmatprep.mubr.msk.f32.mxu0 %vm57_vm0, %v895_v38 }
  0x21   :  { %740 = vmatpush3.bf16.msra.mxu1 %v737_v44 }
  0x22   :  { %613 = vmatmul.mubr.msk.f32.gmra.mrb[2].mxu0 %vm57_vm0, %v910_v42  ;;  %742 = vmatprep.subr.bf16.mxu1 %v741_v58 }
  0x23   :  { %615 = vmatprep.mubr.msk.f32.mxu0 %vm57_vm0, %v915_v43 }
  0x25   :  { %744 = vmatpush3.bf16.msra.mxu1 %v741_v58 }
  0x26   :  { %616 = vmatmul.mubr.msk.f32.gmra.mrb[4].mxu0 %vm57_vm0, %v924_v45 }
  0x27   :  { %618 = vmatprep.mubr.msk.f32.mxu0 %vm57_vm0, %v929_v46 }
  0x2a   :  { %619 = vmatmul.mubr.msk.f32.gmra.mrb[6].mxu0 %vm57_vm0, %v938_v47 }
  0x2b   :  { %621 = vmatprep.mubr.msk.f32.mxu0 %vm57_vm0, %v943_v48 }
  0x2e   :  { %622 = vmatmul.mubr.msk.f32.gmra.mrb[8].mxu0 %vm57_vm0, %v952_v49 }
  0x2f   :  { %624 = vmatprep.mubr.msk.f32.mxu0 %vm57_vm0, %v957_v50 }
  0x32   :  { %625 = vmatmul.mubr.msk.f32.gmra.mrb[10].mxu0 %vm57_vm0, %v966_v51 }
  0x33   :  { %627 = vmatprep.mubr.msk.f32.mxu0 %vm57_vm0, %v971_v52 }
  0x36   :  { %628 = vmatmul.mubr.msk.f32.gmra.mrb[12].mxu0 %vm57_vm0, %v980_v53 }
  0x37   :  { %630 = vmatprep.mubr.msk.f32.mxu0 %vm57_vm0, %v985_v54 }
  0x3a   :  { %631 = vmatmul.mubr.msk.f32.gmra.mrb[14].mxu0 %vm57_vm0, %v994_v55 }
  0xf1   :  { %v611_v60 = vpop.f32.mrb[0].mxu0 }
  0xf2   :  { %v182_v61 = vadd.f32 %v611_v60, %v503_v59  ;;  %v176_v62 = vpop.f32.mrb[1].mxu0 }
  0xf3   :  { %v177_v63 = vadd.f32 %v503_v59, %v176_v62 }
  0xf4   :  { %v256_v2 = vmax.f32 %v182_v61, 0.0  ;;  %v1010_v61 = vld [vmem:[%s1076_s4] ss:$0 sm:$0xff] }
  0xf5   :  { %v614_v0 = vpop.f32.mrb[2].mxu0  ;;  %v255_v1 = vmax.f32 %v177_v63, 0.0 }
  0xf6   :  { %v192_v3 = vadd.f32 %v614_v0, %v503_v59  ;;  %v186_v4 = vpop.f32.mrb[3].mxu0 }
  0xf7   :  { %v187_v5 = vadd.f32 %v503_v59, %v186_v4  ;;  %665 = vmatprep.mubr.f32.mxu1 %v255_v1 }
  0xf8   :  { %666 = vmatmul.mubr.f32.vlgmr.msra.gmra.mrb[0].mxu1 %v256_v2  ;;  %v258_v9 = vmax.f32 %v192_v3, 0.0 }
  0xf9   :  { %v257_v6 = vmax.f32 %v187_v5, 0.0  ;;  %v617_v7 = vpop.f32.mrb[4].mxu0 }
  0xfa   :  { %v202_v10 = vadd.f32 %v617_v7, %v503_v59  ;;  %v196_v11 = vpop.f32.mrb[5].mxu0 }
  0xfb   :  { %v197_v12 = vadd.f32 %v503_v59, %v196_v11  ;;  %668 = vmatprep.mubr.f32.mxu1 %v257_v6 }
  0xfc   :  { %669 = vmatmul.mubr.f32.gmra.mrb[2].mxu1 %v258_v9  ;;  %v260_v15 = vmax.f32 %v202_v10, 0.0 }
  0xfd   :  { %v259_v13 = vmax.f32 %v197_v12, 0.0  ;;  %v620_v14 = vpop.f32.mrb[6].mxu0 }
  0xfe   :  { %v212_v16 = vadd.f32 %v620_v14, %v503_v59  ;;  %v206_v17 = vpop.f32.mrb[7].mxu0 }
  0xff   :  { %v207_v18 = vadd.f32 %v503_v59, %v206_v17  ;;  %671 = vmatprep.mubr.f32.mxu1 %v259_v13 }
 0x100   :  { %672 = vmatmul.mubr.f32.gmra.mrb[4].mxu1 %v260_v15  ;;  %v262_v21 = vmax.f32 %v212_v16, 0.0 }
 0x101   :  { %v261_v19 = vmax.f32 %v207_v18, 0.0  ;;  %v623_v20 = vpop.f32.mrb[8].mxu0 }
 0x102   :  { %v222_v22 = vadd.f32 %v623_v20, %v503_v59  ;;  %v216_v23 = vpop.f32.mrb[9].mxu0 }
 0x103   :  { %v217_v24 = vadd.f32 %v503_v59, %v216_v23  ;;  %674 = vmatprep.mubr.f32.mxu1 %v261_v19 }
 0x104   :  { %675 = vmatmul.mubr.f32.gmra.mrb[6].mxu1 %v262_v21  ;;  %v264_v27 = vmax.f32 %v222_v22, 0.0 }
 0x105   :  { %v263_v25 = vmax.f32 %v217_v24, 0.0  ;;  %v626_v26 = vpop.f32.mrb[10].mxu0 }
 0x106   :  { %v232_v28 = vadd.f32 %v626_v26, %v503_v59  ;;  %v226_v29 = vpop.f32.mrb[11].mxu0 }
 0x107   :  { %v227_v30 = vadd.f32 %v503_v59, %v226_v29  ;;  %677 = vmatprep.mubr.f32.mxu1 %v263_v25 }
 0x108   :  { %678 = vmatmul.mubr.f32.gmra.mrb[8].mxu1 %v264_v27  ;;  %v266_v33 = vmax.f32 %v232_v28, 0.0 }
 0x109   :  { %v265_v31 = vmax.f32 %v227_v30, 0.0  ;;  %v629_v32 = vpop.f32.mrb[12].mxu0 }
 0x10a   :  { %v242_v34 = vadd.f32 %v629_v32, %v503_v59  ;;  %v236_v35 = vpop.f32.mrb[13].mxu0 }
 0x10b   :  { %v237_v36 = vadd.f32 %v503_v59, %v236_v35  ;;  %680 = vmatprep.mubr.f32.mxu1 %v265_v31 }
 0x10c   :  { %681 = vmatmul.mubr.f32.gmra.mrb[10].mxu1 %v266_v33  ;;  %v268_v41 = vmax.f32 %v242_v34, 0.0 }
 0x10d   :  { %v267_v39 = vmax.f32 %v237_v36, 0.0  ;;  %v632_v40 = vpop.f32.mrb[14].mxu0 }
 0x10e   :  { %v252_v44 = vadd.f32 %v632_v40, %v503_v59  ;;  %v246_v56 = vpop.f32.mrb[15].mxu0 }
 0x10f   :  { %v247_v57 = vadd.f32 %v503_v59, %v246_v56  ;;  %683 = vmatprep.mubr.f32.mxu1 %v267_v39 }
 0x110   :  { %684 = vmatmul.mubr.f32.gmra.mrb[12].mxu1 %v268_v41  ;;  %v270_v60 = vmax.f32 %v252_v44, 0.0 }
 0x111   :  { %v269_v58 = vmax.f32 %v247_v57, 0.0 }
 0x113   :  { %686 = vmatprep.mubr.f32.mxu1 %v269_v58 }
 0x114   :  { %687 = vmatmul.mubr.f32.gmra.mrb[14].mxu1 %v270_v60 }
 0x1cb   :  { %v667_v62 = vpop.f32.mrb[0].mxu1 }
 0x1cc   :  { %v366_v63 = vadd.f32 %v667_v62, %v1010_v61  ;;  %v360_v0 = vpop.f32.mrb[1].mxu1 }
 0x1cd   :  { %v361_v1 = vadd.f32 %v1010_v61, %v360_v0 }
 0x1ce   :  { %v440_v2 = vmax.f32 %v366_v63, 0.0 }
 0x1cf   :  { %v439_v3 = vmax.f32 %v361_v1, 0.0  ;;  %v670_v59 = vpop.f32.mrb[2].mxu1 }
 0x1d0   :  { %v456_v4 = vadd.f32 %v440_v2, %v890_v37  ;;  %v376_v5 = vadd.f32 %v670_v59, %v1010_v61  ;;  %v370_v6 = vpop.f32.mrb[3].mxu1 }
 0x1d1   :  { %v455_v7 = vadd.f32 %v439_v3, %v826_v8  ;;  %v371_v9 = vadd.f32 %v1010_v61, %v370_v6 }
 0x1d2   :  { %472 = vst.msk [vmem:[#allocation2 + $0x8] sm:$0xff] %vm57_vm0, %v456_v4  ;;  %v442_v10 = vmax.f32 %v376_v5, 0.0 }
 0x1d3   :  { %471 = vst.msk [vmem:[#allocation2] sm:$0xff] %vm57_vm0, %v455_v7  ;;  %v441_v11 = vmax.f32 %v371_v9, 0.0  ;;  %v673_v12 = vpop.f32.mrb[4].mxu1 }
 0x1d4   :  { %v458_v13 = vadd.f32 %v442_v10, %v910_v42  ;;  %v386_v14 = vadd.f32 %v673_v12, %v1010_v61  ;;  %v380_v15 = vpop.f32.mrb[5].mxu1 }
 0x1d5   :  { %v457_v37 = vadd.f32 %v441_v11, %v895_v38  ;;  %v381_v16 = vadd.f32 %v1010_v61, %v380_v15 }
 0x1d6   :  { %474 = vst.msk [vmem:[#allocation2 + $0x18] sm:$0xff] %vm57_vm0, %v458_v13  ;;  %v444_v8 = vmax.f32 %v386_v14, 0.0 }
 0x1d7   :  { %473 = vst.msk [vmem:[#allocation2 + $0x10] sm:$0xff] %vm57_vm0, %v457_v37  ;;  %v443_v17 = vmax.f32 %v381_v16, 0.0  ;;  %v676_v18 = vpop.f32.mrb[6].mxu1 }
 0x1d8   :  { %v460_v19 = vadd.f32 %v444_v8, %v924_v45  ;;  %v396_v20 = vadd.f32 %v676_v18, %v1010_v61  ;;  %v390_v21 = vpop.f32.mrb[7].mxu1 }
 0x1d9   :  { %v459_v42 = vadd.f32 %v443_v17, %v915_v43  ;;  %v391_v22 = vadd.f32 %v1010_v61, %v390_v21 }
 0x1da   :  { %476 = vst.msk [vmem:[#allocation2 + $0x28] sm:$0xff] %vm57_vm0, %v460_v19  ;;  %v446_v38 = vmax.f32 %v396_v20, 0.0 }
 0x1db   :  { %475 = vst.msk [vmem:[#allocation2 + $0x20] sm:$0xff] %vm57_vm0, %v459_v42  ;;  %v445_v23 = vmax.f32 %v391_v22, 0.0  ;;  %v679_v24 = vpop.f32.mrb[8].mxu1 }
 0x1dc   :  { %v462_v25 = vadd.f32 %v446_v38, %v938_v47  ;;  %v406_v26 = vadd.f32 %v679_v24, %v1010_v61  ;;  %v400_v27 = vpop.f32.mrb[9].mxu1 }
 0x1dd   :  { %v461_v45 = vadd.f32 %v445_v23, %v929_v46  ;;  %v401_v28 = vadd.f32 %v1010_v61, %v400_v27 }
 0x1de   :  { %478 = vst.msk [vmem:[#allocation2 + $0x38] sm:$0xff] %vm57_vm0, %v462_v25  ;;  %v448_v43 = vmax.f32 %v406_v26, 0.0 }
 0x1df   :  { %477 = vst.msk [vmem:[#allocation2 + $0x30] sm:$0xff] %vm57_vm0, %v461_v45  ;;  %v447_v29 = vmax.f32 %v401_v28, 0.0  ;;  %v682_v30 = vpop.f32.mrb[10].mxu1 }
 0x1e0   :  { %v464_v31 = vadd.f32 %v448_v43, %v952_v49  ;;  %v416_v32 = vadd.f32 %v682_v30, %v1010_v61  ;;  %v410_v33 = vpop.f32.mrb[11].mxu1 }
 0x1e1   :  { %v463_v47 = vadd.f32 %v447_v29, %v943_v48  ;;  %v411_v34 = vadd.f32 %v1010_v61, %v410_v33 }
 0x1e2   :  { %480 = vst.msk [vmem:[#allocation2 + $0x48] sm:$0xff] %vm57_vm0, %v464_v31  ;;  %v450_v46 = vmax.f32 %v416_v32, 0.0 }
 0x1e3   :  { %479 = vst.msk [vmem:[#allocation2 + $0x40] sm:$0xff] %vm57_vm0, %v463_v47  ;;  %v449_v35 = vmax.f32 %v411_v34, 0.0  ;;  %v685_v36 = vpop.f32.mrb[12].mxu1 }
 0x1e4   :  { %v466_v39 = vadd.f32 %v450_v46, %v966_v51  ;;  %v426_v40 = vadd.f32 %v685_v36, %v1010_v61  ;;  %v420_v41 = vpop.f32.mrb[13].mxu1 }
 0x1e5   :  { %v465_v49 = vadd.f32 %v449_v35, %v957_v50  ;;  %v421_v44 = vadd.f32 %v1010_v61, %v420_v41 }
 0x1e6   :  { %482 = vst.msk [vmem:[#allocation2 + $0x58] sm:$0xff] %vm57_vm0, %v466_v39  ;;  %v452_v48 = vmax.f32 %v426_v40, 0.0 }
 0x1e7   :  { %481 = vst.msk [vmem:[#allocation2 + $0x50] sm:$0xff] %vm57_vm0, %v465_v49  ;;  %v451_v56 = vmax.f32 %v421_v44, 0.0  ;;  %v688_v57 = vpop.f32.mrb[14].mxu1 }
 0x1e8   :  { %v468_v58 = vadd.f32 %v452_v48, %v980_v53  ;;  %v436_v60 = vadd.f32 %v688_v57, %v1010_v61  ;;  %v430_v62 = vpop.f32.mrb[15].mxu1 }
 0x1e9   :  { %v467_v51 = vadd.f32 %v451_v56, %v971_v52  ;;  %v431_v63 = vadd.f32 %v1010_v61, %v430_v62 }
 0x1ea   :  { %484 = vst.msk [vmem:[#allocation2 + $0x68] sm:$0xff] %vm57_vm0, %v468_v58  ;;  %v454_v50 = vmax.f32 %v436_v60, 0.0 }
 0x1eb   :  { %483 = vst.msk [vmem:[#allocation2 + $0x60] sm:$0xff] %vm57_vm0, %v467_v51  ;;  %v453_v0 = vmax.f32 %v431_v63, 0.0 }
 0x1ec   :  { %v470_v1 = vadd.f32 %v454_v50, %v994_v55 }
 0x1ed   :  { %v469_v2 = vadd.f32 %v453_v0, %v985_v54 }
 0x1ee   :  { %486 = vst.msk [vmem:[#allocation2 + $0x78] sm:$0xff] %vm57_vm0, %v470_v1 }
 0x1ef   :  { %485 = vst.msk [vmem:[#allocation2 + $0x70] sm:$0xff] %vm57_vm0, %v469_v2 }
 0x1f0   :  { %491 = vsyncadd [#allocation3], 1792  ;;  %s772_s3 = smov [#allocation2]  }
 0x1f1   :  { %s492_s4 = sshll.u32 %s772_s3, 4  ;;  %s493_s4 = int_to_ptr.vmem [resolvable:$true] %s492_s4 }
 0x1f2   :  { %s748_s8 = scalar_lea.vmem %s493_s4, 256  ;;  %s752_s9 = scalar_lea.vmem %s493_s4, 2048 }
 0x1f3   :  { %p749_p0 = scmp.ne.s32.totalorder %s493_s4, %s748_s8  ;;  %p753_p1 = scmp.lt.s32.totalorder %s493_s4, %s493_s4 }
 0x1f4   :  { %p754_p2 = scmp.lt.s32.totalorder %s752_s9, %s748_s8 }
 0x1f6   :  { %p755_p3 = por %p754_p2, %p753_p1 }
 0x1f8   :  { %p756_p4 = pnand %p755_p3, %p749_p0 }
 0x1fa   :  { %759 = shalt.err (!%p756_p4)
}
 0x1fb   :  { %s760_s12 = scalar_lea.hbm %s1077_s5, 256 }
 0x1fc   :  { %p761_p5 = scmp.ne.s32.totalorder %s1077_s5, %s760_s12  ;;  %p764_p6 = scmp.lt.u32.totalorder %s760_s12, %s1077_s5 }
 0x1fe   :  { %p766_p7 = pnand %p764_p6, %p761_p5 }
 0x200   :  { %769 = shalt.err (!%p766_p7)
}
 0x201   :  { %s773_s17 = smov 128   ;;  %s774_s18 = smov 8  }
 0x202   :  { %498 = dma.vmem_to_hbm [thread:$0]  %s493_s4, 256, %s1077_s5, [#allocation3], %s773_s17, %s773_s17, %s774_s18  }
 0x203   :  { %770 = dma.done.wait [#allocation3], 2048  }
 0x204   :  { %771 = vsyncadd [#allocation3], 4294965248 }
 0x205   :  { %502 = vsyncpa [#allocation3], 1 }

</bundles_post_ra>
